<compile_context>
chip_gen: v7x
topology: tpu7x:2x2x1
jax: 0.10.0
libtpu: 0.0.40
codegen_flags: <defaults>
</compile_context>

<pallas_src>
import functools

import jax
import jax.numpy as jnp
from jax.experimental import pallas as pl
from jax.experimental.pallas import tpu as pltpu

_LANES = 128
_SUBLANES = 8
_ROW_ALIGN = 16          # rows multiple of 16 -> valid sublane tiling for f32 and bf16
_TILE_ROWS = 2048        # (2048, 128) f32 block = 1 MiB per input per grid step


def _kl_partial_kernel(mean_ref, logvar_ref, out_ref, *, total_rows, tile_rows,
                       mask_tail):
    """Per-block partial sum of (1 + logvar - mean^2 - exp(logvar))."""
    m = mean_ref[...].astype(jnp.float32)
    lv = logvar_ref[...].astype(jnp.float32)
    val = 1.0 + lv - m * m - jnp.exp(lv)                  # VPU + EUP elementwise

    if mask_tail:
        # The last block may extend past the array; out-of-bounds rows hold
        # garbage in VMEM, so zero them before accumulating.
        row_start = pl.program_id(0) * tile_rows
        ridx = jax.lax.broadcasted_iota(jnp.int32, val.shape, 0)
        val = jnp.where(row_start + ridx < total_rows, val, 0.0)

    # Reduce (tile_rows, 128) -> (8, 128) with plain VPU vreg adds (no XLU,
    # no loop-carried scalar).  The final cross-lane reduce happens outside.
    partial = val.reshape(tile_rows // _SUBLANES, _SUBLANES, _LANES).sum(axis=0)
    out_ref[0] = partial


def mean_std_loss(predicted_risk, predicted_tr):
    """JAX/Pallas equivalent of MeanStdLoss.forward.

    predicted_risk -> `mean`, predicted_tr -> `logvar`; returns a scalar f32.
    """
    mean = predicted_risk
    logvar = predicted_tr
    assert mean.shape == logvar.shape, "mean / logvar must have the same shape"

    def _prep(x):
        if x.dtype not in (jnp.float32, jnp.bfloat16):
            x = x.astype(jnp.float32)
        return x.reshape(-1)

    mean = _prep(mean)
    logvar = _prep(logvar)

    n = mean.shape[0]
    chunk = _ROW_ALIGN * _LANES                 # 2048-element alignment unit
    pad = (-n) % chunk
    if pad:
        # Only materialize a padded copy when the size is actually misaligned.
        # Zero padding contributes exactly 0 to the sum (1 + 0 - 0 - exp(0)).
        mean = jnp.pad(mean, (0, pad))
        logvar = jnp.pad(logvar, (0, pad))

    rows = (n + pad) // _LANES                  # multiple of 16
    tile_rows = min(_TILE_ROWS, rows)           # still a multiple of 16
    num_blocks = -(-rows // tile_rows)
    mask_tail = (rows % tile_rows) != 0

    mean2d = mean.reshape(rows, _LANES)
    logvar2d = logvar.reshape(rows, _LANES)

    kernel = functools.partial(
        _kl_partial_kernel,
        total_rows=rows,
        tile_rows=tile_rows,
        mask_tail=mask_tail,
    )

    partials = pl.pallas_call(
        kernel,
        out_shape=jax.ShapeDtypeStruct((num_blocks, _SUBLANES, _LANES),
                                       jnp.float32),
        grid_spec=pltpu.PrefetchScalarGridSpec(
            num_scalar_prefetch=0,
            grid=(num_blocks,),
            in_specs=[
                pl.BlockSpec((tile_rows, _LANES), lambda i: (i, 0)),
                pl.BlockSpec((tile_rows, _LANES), lambda i: (i, 0)),
            ],
            out_specs=pl.BlockSpec((1, _SUBLANES, _LANES), lambda i: (i, 0, 0)),
        ),
        compiler_params=pltpu.CompilerParams(
            # Each block writes an independent partial -> megacore-shardable.
            dimension_semantics=("parallel",),
        ),
    )(mean2d, logvar2d)

    return jnp.float32(-0.5) * jnp.sum(partials)


def _reference(mean, logvar):
    mean = mean.astype(jnp.float32)
    logvar = logvar.astype(jnp.float32)
    return -0.5 * jnp.sum(1.0 + logvar - mean**2 - jnp.exp(logvar))


if __name__ == "__main__":
    key = jax.random.PRNGKey(0)
    k_mean, k_logvar = jax.random.split(key)

    # small shapes consistent with a VAE latent head: (batch, ch, h, w)
    predicted_risk = jax.random.normal(k_mean, (2, 4, 16, 16), dtype=jnp.float32)
    predicted_tr = 0.1 * jax.random.normal(k_logvar, (2, 4, 16, 16),
                                           dtype=jnp.float32)

    loss = jax.block_until_ready(mean_std_loss(predicted_risk, predicted_tr))
    ref = _reference(predicted_risk, predicted_tr)
    assert jnp.allclose(loss, ref, rtol=1e-5, atol=1e-5), (loss, ref)

    # Secondary check: misaligned element count -> exercises the pad path,
    # multiple grid blocks, and the in-kernel tail mask.
    k3, k4 = jax.random.split(jax.random.PRNGKey(1))
    m_big = jax.random.normal(k3, (300, 1001), dtype=jnp.float32)
    lv_big = 0.1 * jax.random.normal(k4, (300, 1001), dtype=jnp.float32)
    loss_big = jax.block_until_ready(mean_std_loss(m_big, lv_big))
    ref_big = _reference(m_big, lv_big)
    assert jnp.allclose(loss_big, ref_big, rtol=1e-4), (loss_big, ref_big)

    print("KERNEL_OK")
</pallas_src>

<mosaic_0001>
module attributes {stable_mosaic.version = 11 : i64} {
  func.func @_kl_partial_kernel(%arg0: i32, %arg1: memref<16x128xf32, #tpu.memory_space<vmem>>, %arg2: memref<16x128xf32, #tpu.memory_space<vmem>>, %arg3: memref<1x8x128xf32, #tpu.memory_space<vmem>>) attributes {dimension_semantics = [#tpu.dimension_semantics<parallel>], iteration_bounds = array<i64: 1>, scalar_prefetch = 0 : i64, scratch_operands = 0 : i64, tpu.core_type = #tpu.core_type<tc>, window_params = [{transform_indices = @transform_0, window_bounds = array<i64: 16, 128>}, {transform_indices = @transform_1, window_bounds = array<i64: 16, 128>}, {transform_indices = @transform_2, window_bounds = array<i64: 1, 8, 128>}]} {
    %c0 = arith.constant 0 : index
    %c0_0 = arith.constant 0 : index
    %0 = vector.load %arg1[%c0, %c0_0] : memref<16x128xf32, #tpu.memory_space<vmem>>, vector<16x128xf32>
    %c0_1 = arith.constant 0 : index
    %c0_2 = arith.constant 0 : index
    %1 = vector.load %arg2[%c0_1, %c0_2] : memref<16x128xf32, #tpu.memory_space<vmem>>, vector<16x128xf32>
    %cst = arith.constant 1.000000e+00 : f32
    %2 = vector.broadcast %cst : f32 to vector<16x128xf32>
    %3 = arith.addf %2, %1 : vector<16x128xf32>
    %4 = arith.mulf %0, %0 : vector<16x128xf32>
    %5 = arith.subf %3, %4 : vector<16x128xf32>
    %6 = math.exp %1 : vector<16x128xf32>
    %7 = arith.subf %5, %6 : vector<16x128xf32>
    %8 = vector.shape_cast %7 : vector<16x128xf32> to vector<2x8x128xf32>
    %cst_3 = arith.constant dense<0.000000e+00> : vector<8x128xf32>
    %9 = vector.multi_reduction <add>, %8, %cst_3 [0] : vector<2x8x128xf32> to vector<8x128xf32>
    %c0_4 = arith.constant 0 : index
    %c0_5 = arith.constant 0 : index
    %c0_6 = arith.constant 0 : index
    %10 = vector.load %arg3[%c0_4, %c0_5, %c0_6] : memref<1x8x128xf32, #tpu.memory_space<vmem>>, vector<1x8x128xf32>
    %11 = vector.shape_cast %10 : vector<1x8x128xf32> to vector<8x128xf32>
    %12 = vector.shape_cast %9 : vector<8x128xf32> to vector<1x8x128xf32>
    tpu.vector_store %arg3[%c0_4, %c0_5, %c0_6], %12 {strides = array<i32>} : memref<1x8x128xf32, #tpu.memory_space<vmem>>, vector<1x8x128xf32>,
    return
  }
  func.func @transform_0(%arg0: i32) -> (i32, i32) {
    %c0_i32 = arith.constant 0 : i32
    %c0_i32_0 = arith.constant 0 : i32
    return %arg0, %c0_i32 : i32, i32
  }
  func.func @transform_1(%arg0: i32) -> (i32, i32) {
    %c0_i32 = arith.constant 0 : i32
    %c0_i32_0 = arith.constant 0 : i32
    return %arg0, %c0_i32 : i32, i32
  }
  func.func @transform_2(%arg0: i32) -> (i32, i32, i32) {
    %c0_i32 = arith.constant 0 : i32
    %c0_i32_0 = arith.constant 0 : i32
    %c0_i32_1 = arith.constant 0 : i32
    return %arg0, %c0_i32, %c0_i32_0 : i32, i32, i32
  }
}

</mosaic_0001>

<bundles_post_ra>
// kernel: tpu_custom_call.1
= control target key start
LH: loop header
LB: loop body
LE: loop exit
PB: predicated region body
PF: predicated region fallthrough
CT: control target
= control target key end

     0   :  { %7 = vsyncpa [#allocation3], 0  ;;  %s211_s0 = inlined_call_operand.hbm [shape: f32[16,128], index: 0, kind: input, shape index: {}]   ;;  %s212_s1 = inlined_call_operand.hbm [shape: f32[16,128], index: 1, kind: input, shape index: {}]   ;;  %s213_s2 = inlined_call_operand.hbm [shape: f32[1,8,128], index: 2, kind: output, shape index: {}]  }
   0x1   :  { %8 = vsyncpa [#allocation6], 0 }
   0x2   :  { %9 = vsyncpa [#allocation4], 0  ;;  %s155_s9 = smov [#allocation2]   ;;  %s83_s13 = scalar_lea.hbm %s211_s0, 256 }
   0x3   :  { %s15_s10 = sshll.u32 %s155_s9, 4  ;;  %p84_p0 = scmp.ne.s32.totalorder %s211_s0, %s83_s13  ;;  %s16_s10 = int_to_ptr.vmem [resolvable:$true] %s15_s10 }
   0x4   :  { %p87_p1 = scmp.lt.u32.totalorder %s83_s13, %s211_s0 }
   0x6   :  { %p89_p2 = pnand %p87_p1, %p84_p0 }
   0x8   :  { %92 = shalt.err (!%p89_p2)
}
   0x9   :  { %s93_s18 = scalar_lea.vmem %s16_s10, 256  ;;  %p98_p4 = scmp.lt.s32.totalorder %s16_s10, %s16_s10 }
   0xa   :  { %p94_p3 = scmp.ne.s32.totalorder %s16_s10, %s93_s18  ;;  %p99_p5 = scmp.lt.s32.totalorder %s93_s18, %s93_s18 }
   0xc   :  { %p100_p6 = por %p99_p5, %p98_p4 }
   0xe   :  { %p101_p7 = pnand %p100_p6, %p94_p3 }
  0x10   :  { %104 = shalt.err (!%p101_p7)
}
  0x11   :  { %s156_s19 = smov 128   ;;  %s157_s20 = smov 8  }
  0x12   :  { %21 = dma.hbm_to_vmem [thread:$0]  %s211_s0, 256, %s16_s10, [#allocation3], %s156_s19, %s156_s19, %s157_s20  }
  0x13   :  { %s158_s23 = smov [#allocation5]   ;;  %s105_s27 = scalar_lea.hbm %s212_s1, 256 }
  0x14   :  { %s27_s24 = sshll.u32 %s158_s23, 4  ;;  %p106_p8 = scmp.ne.s32.totalorder %s212_s1, %s105_s27  ;;  %s28_s24 = int_to_ptr.vmem [resolvable:$true] %s27_s24 }
  0x15   :  { %p109_p9 = scmp.lt.u32.totalorder %s105_s27, %s212_s1 }
  0x17   :  { %p111_p10 = pnand %p109_p9, %p106_p8 }
  0x19   :  { %114 = shalt.err (!%p111_p10)
}
  0x1a   :  { %s115_s4 = scalar_lea.vmem %s28_s24, 256  ;;  %p120_p12 = scmp.lt.s32.totalorder %s28_s24, %s28_s24 }
  0x1b   :  { %p116_p11 = scmp.ne.s32.totalorder %s28_s24, %s115_s4  ;;  %p121_p13 = scmp.lt.s32.totalorder %s115_s4, %s115_s4 }
  0x1d   :  { %p122_p0 = por %p121_p13, %p120_p12 }
  0x1f   :  { %p123_p1 = pnand %p122_p0, %p116_p11 }
  0x21   :  { %126 = shalt.err (!%p123_p1)
}
  0x22   :  { %33 = dma.hbm_to_vmem [thread:$0]  %s212_s1, 256, %s28_s24, [#allocation6], %s156_s19, %s156_s19, %s157_s20  }
  0x23   :  { %149 = dma.done.wait [#allocation3], 256  }
  0x24   :  { %150 = vsyncadd [#allocation3], 4294967040 }
  0x25   :  { %151 = dma.done.wait [#allocation6], 256  }
  0x26   :  { %152 = vsyncadd [#allocation6], 4294967040  ;;  %v42_v0 = vld [vmem:[#allocation5] sm:$0xff]  ;;  %v43_v1 = vld [vmem:[#allocation5 + $0x8] sm:$0xff]  ;;  %s159_s1 = smov [#allocation7]  }
  0x27   :  { %v50_v2 = vmul.f32 1.442695, %v42_v0  ;;  %v52_v3 = vmul.f32 1.442695, %v43_v1  ;;  %v40_v4 = vld [vmem:[#allocation2] sm:$0xff]  ;;  %v41_v5 = vld [vmem:[#allocation2 + $0x8] sm:$0xff] }
  0x28   :  { %v44_v6 = vadd.f32 1.0, %v42_v0  ;;  %v46_v7 = vmul.f32 %v40_v4, %v40_v4  ;;  %v45_v8 = vadd.f32 1.0, %v43_v1  ;;  %v47_v9 = vmul.f32 %v41_v5, %v41_v5  ;;  %s64_s6 = sshll.u32 %s159_s1, 4  ;;  %s65_s6 = int_to_ptr.vmem [resolvable:$true] %s64_s6 }
  0x29   :  { %79 = vpow2.f32 %v50_v2  ;;  %s127_s7 = scalar_lea.vmem %s65_s6, 128  ;;  %p132_p3 = scmp.lt.s32.totalorder %s65_s6, %s65_s6 }
  0x2a   :  { %81 = vpow2.f32 %v52_v3  ;;  %v48_v10 = vsub.f32 %v44_v6, %v46_v7  ;;  %v49_v11 = vsub.f32 %v45_v8, %v47_v9  ;;  %p128_p2 = scmp.ne.s32.totalorder %s65_s6, %s127_s7  ;;  %p133_p4 = scmp.lt.s32.totalorder %s127_s7, %s127_s7 }
  0x2c   :  { %p134_p5 = por %p133_p4, %p132_p3 }
  0x2e   :  { %p135_p6 = pnand %p134_p5, %p128_p2 }
  0x33   :  { %v80_v12 = vpop.eup %79 }
  0x34   :  { %v82_v13 = vpop.eup %81  ;;  %v54_v14 = vsub.f32 %v48_v10, %v80_v12 }
  0x35   :  { %v55_v15 = vsub.f32 %v49_v11, %v82_v13 }
  0x37   :  { %v56_v16 = vadd.f32 %v55_v15, %v54_v14 }
  0x39   :  { %57 = vst [vmem:[#allocation7] sm:$0xff] %v56_v16 }
  0x3a   :  { %138 = shalt.err (!%p135_p6)
}
  0x3b   :  { %s139_s10 = scalar_lea.hbm %s213_s2, 128 }
  0x3c   :  { %p140_p7 = scmp.ne.s32.totalorder %s213_s2, %s139_s10  ;;  %p143_p8 = scmp.lt.u32.totalorder %s139_s10, %s213_s2 }
  0x3e   :  { %p145_p9 = pnand %p143_p8, %p140_p7 }
  0x40   :  { %148 = shalt.err (!%p145_p9)
}
  0x41   :  { %67 = dma.vmem_to_hbm [thread:$0]  %s65_s6, 128, %s213_s2, [#allocation4]  }
  0x42   :  { %153 = dma.done.wait [#allocation4], 128  }
  0x43   :  { %154 = vsyncadd [#allocation4], 4294967168 }
  0x44   :  { %71 = vsyncpa [#allocation3], 1 }
  0x45   :  { %72 = vsyncpa [#allocation6], 1 }
  0x46   :  { %73 = vsyncpa [#allocation4], 1 }

</bundles_post_ra>
